<compile_context>
chip_gen: v5e
topology: v5e:2x2
jax: 0.10.0
libtpu: 0.0.40
codegen_flags: <defaults>
</compile_context>

<pallas_src>
import functools

import jax
import jax.numpy as jnp
from jax.experimental import pallas as pl
from jax.experimental.pallas import tpu as pltpu


def hub_kernel(x_ref, w_ref, b_ref, o_ref, *, m_block, batch):
    # x_ref: (B, H)                     shared activation block (bf16)
    # w_ref: (m_block, H, H)            this block's weights (bf16)
    # b_ref: (m_block, H) or (m_block, 1, H)   this block's biases (f32)
    # o_ref: (m_block * B, H)           rows of the concatenated output of this block
    x = x_ref[...]
    h = o_ref.shape[-1]

    def body(m, carry):
        # One (B,H) x (H,H) MXU dot per model, f32 accumulation.
        y = jnp.dot(x, w_ref[m], preferred_element_type=jnp.float32)
        y = y + b_ref[pl.ds(m, 1)].reshape(1, h)            # (1, H) broadcast over rows
        row = pl.multiple_of(m * batch, batch)               # 8-aligned sublane offset
        o_ref[pl.ds(row, batch), :] = y.astype(o_ref.dtype)  # lane-dense store
        return carry

    # Visible loop with bounded unroll: bounded live ranges / no vreg-spill blowup
    # at large m_block (a static Python `for` would not bound them).
    jax.lax.fori_loop(0, m_block, body, 0, unroll=min(m_block, 8))


def _choose_m_block(n_models, per_model_bytes, *, target_block_bytes=2 << 20,
                    min_steps=8):
    """Models fused per grid step: ~1-4 MiB of weights per step (pipelinable DMA
    that fits v7x's 64 MiB VMEM when double-buffered) while keeping >= min_steps
    grid steps so the weight stream overlaps compute and both v7x TCs get work."""
    cap = max(1, min(n_models, target_block_bytes // max(per_model_bytes, 1)))
    cap = min(cap, max(1, n_models // min_steps))
    # Prefer a divisor that is a multiple of 8 so the bias can use a dense
    # (m_block, H) block (sublane rule); otherwise fall back to any divisor.
    for mb in range(cap, 0, -1):
        if n_models % mb == 0 and (mb % 8 == 0 or mb == n_models):
            return mb
    for mb in range(cap, 0, -1):
        if n_models % mb == 0:
            return mb
    return 1


def hub_layer(x, W, b, *, m_block=None, compute_dtype=jnp.bfloat16):
    """out[m*B:(m+1)*B, :] = x @ W[m] + b[m]   ==  concat along dim 0."""
    M, H, H2 = W.shape
    assert H == H2, "square Linear weights expected"
    B, Hx = x.shape
    assert Hx == H
    # (8,128)-rule guards for the single-tile BlockSpecs used at this scale.
    assert H % 128 == 0, "hidden dim must be a multiple of 128 (lane dim)"
    assert B % 8 == 0, "batch must be a multiple of 8 (sublane dim)"

    # bf16 weight/activation stream, f32 accumulate.  (On v7x, fp8 weights are a
    # further option if accuracy allows; the v7x MXU has no int8.)
    xc = x.astype(compute_dtype)
    Wc = W.astype(compute_dtype)

    if m_block is None:
        m_block = _choose_m_block(M, H * H * jnp.dtype(compute_dtype).itemsize)
    assert M % m_block == 0
    n_blocks = M // m_block

    # Bias layout: dense (M, H) rows when the (8,128) sublane rule allows it,
    # otherwise one (1, H) row per model (trivially small either way).
    if m_block % 8 == 0 or m_block == M:
        b_arg = b.reshape(M, H).astype(jnp.float32)
        b_spec = pl.BlockSpec((m_block, H), lambda mb: (mb, 0))
    else:
        b_arg = b.reshape(M, 1, H).astype(jnp.float32)
        b_spec = pl.BlockSpec((m_block, 1, H), lambda mb: (mb, 0, 0))

    kernel = functools.partial(hub_kernel, m_block=m_block, batch=B)

    out_dtype = x.dtype
    itemsize = lambda a: jnp.dtype(a.dtype).itemsize

    # Explicit VMEM budget: double-buffered blocks of every operand + the output.
    vmem_need = (
        2 * m_block * H * H * itemsize(Wc)                       # weights (dominant)
        + 2 * B * H * itemsize(xc)                               # shared input
        + 2 * (b_arg.size // n_blocks) * itemsize(b_arg)         # bias block
        + 2 * m_block * B * H * jnp.dtype(out_dtype).itemsize    # output block
    )
    vmem_limit = int(min(48 << 20, max(16 << 20, 2 * vmem_need + (4 << 20))))

    cost = pl.CostEstimate(
        flops=2 * M * B * H * H,
        transcendentals=0,
        bytes_accessed=(M * H * H * itemsize(Wc)                 # weight stream
                        + B * H * itemsize(xc)
                        + b_arg.size * itemsize(b_arg)
                        + M * B * H * jnp.dtype(out_dtype).itemsize),
    )

    return pl.pallas_call(
        kernel,
        out_shape=jax.ShapeDtypeStruct((M * B, H), out_dtype),
        grid_spec=pltpu.PrefetchScalarGridSpec(
            num_scalar_prefetch=0,
            grid=(n_blocks,),
            in_specs=[
                # shared input: same block every step (no re-DMA)
                pl.BlockSpec((B, H), lambda mb: (0, 0)),
                # m_block weight matrices per step: ~1-4 MiB pipelined DMA
                pl.BlockSpec((m_block, H, H), lambda mb: (mb, 0, 0)),
                b_spec,
            ],
            # block mb -> rows [mb*m_block*B, (mb+1)*m_block*B)  == concat(dim=0)
            out_specs=pl.BlockSpec((m_block * B, H), lambda mb: (mb, 0)),
        ),
        compiler_params=pltpu.CompilerParams(
            dimension_semantics=("parallel",),
            vmem_limit_bytes=vmem_limit,
        ),
        cost_estimate=cost,
    )(xc, Wc, b_arg)


if __name__ == "__main__":
    M, B, H = 64, 16, 128   # 64 hub models, batch 16, hidden 128 (small demo)

    key = jax.random.PRNGKey(0)
    kx, kw, kb = jax.random.split(key, 3)

    x = jax.random.normal(kx, (B, H), dtype=jnp.float32)
    # deterministic synthetic "model" parameters (stacked Linear layers, pre-transposed)
    W = 0.05 * jax.random.normal(kw, (M, H, H), dtype=jnp.float32)
    b = 0.1 * jax.random.normal(kb, (M, H), dtype=jnp.float32)

    out = hub_layer(x, W, b)
    out = jax.block_until_ready(out)

    # pure-JAX reference of HubLayer.forward with Linear sub-models, dim=0,
    # evaluated on the same bf16-cast operands the kernel consumes.
    xc = x.astype(jnp.bfloat16)
    Wc = W.astype(jnp.bfloat16)
    ref = jnp.concatenate(
        [jnp.dot(xc, Wc[m], preferred_element_type=jnp.float32) + b[m]
         for m in range(M)], axis=0)

    assert out.shape == (M * B, H)
    err = float(jnp.max(jnp.abs(out.astype(jnp.float32) - ref)))
    assert jnp.allclose(out.astype(jnp.float32), ref, atol=1e-3, rtol=1e-3), err

    print("KERNEL_OK")
</pallas_src>

<mosaic_0001>
module attributes {stable_mosaic.version = 11 : i64} {
  func.func @hub_kernel(%arg0: i32, %arg1: memref<16x128xbf16, #tpu.memory_space<vmem>>, %arg2: memref<8x128x128xbf16, #tpu.memory_space<vmem>>, %arg3: memref<8x128xf32, #tpu.memory_space<vmem>>, %arg4: memref<128x128xf32, #tpu.memory_space<vmem>>) attributes {dimension_semantics = [#tpu.dimension_semantics<parallel>], iteration_bounds = array<i64: 8>, scalar_prefetch = 0 : i64, scratch_operands = 0 : i64, tpu.core_type = #tpu.core_type<tc>, window_params = [{pipeline_mode = #tpu.pipeline_mode<synchronous>, transform_indices = @transform_0, window_bounds = array<i64: 16, 128>}, {transform_indices = @transform_1, window_bounds = array<i64: 8, 128, 128>}, {transform_indices = @transform_2, window_bounds = array<i64: 8, 128>}, {transform_indices = @transform_3, window_bounds = array<i64: 128, 128>}]} {
    %c0 = arith.constant 0 : index
    %c0_0 = arith.constant 0 : index
    %0 = vector.load %arg1[%c0, %c0_0] : memref<16x128xbf16, #tpu.memory_space<vmem>>, vector<16x128xbf16>
    %c0_i32 = arith.constant 0 : i32
    %1 = arith.index_cast %c0_i32 : i32 to index
    %c0_1 = arith.constant 0 : index
    %c0_2 = arith.constant 0 : index
    %2 = vector.load %arg2[%1, %c0_1, %c0_2] : memref<8x128x128xbf16, #tpu.memory_space<vmem>>, vector<1x128x128xbf16>
    %3 = vector.shape_cast %2 : vector<1x128x128xbf16> to vector<128x128xbf16>
    %cst = arith.constant dense<0.000000e+00> : vector<16x128xf32>
    %4 = tpu.matmul %0, %3, %cst {dimension_numbers = #tpu.dot_dimension_numbers<[1], [0], [0], [1], [0, 0, 1, 1], [], []>} : vector<16x128xbf16>, vector<128x128xbf16>, vector<16x128xf32> -> vector<16x128xf32>
    %5 = arith.index_cast %c0_i32 : i32 to index
    %c0_3 = arith.constant 0 : index
    %6 = vector.load %arg3[%5, %c0_3] : memref<8x128xf32, #tpu.memory_space<vmem>>, vector<1x128xf32>
    %7 = vector.broadcast %6 : vector<1x128xf32> to vector<16x128xf32>
    %8 = arith.addf %4, %7 : vector<16x128xf32>
    %c16_i32 = arith.constant 16 : i32
    %9 = arith.muli %c0_i32, %c16_i32 : i32
    %10 = tpu.assume_multiple %9, 16 : i32
    %11 = arith.index_cast %10 : i32 to index
    %c0_4 = arith.constant 0 : index
    %12 = vector.load %arg4[%11, %c0_4] : memref<128x128xf32, #tpu.memory_space<vmem>>, vector<16x128xf32>
    tpu.vector_store %arg4[%11, %c0_4], %8 {strides = array<i32>} : memref<128x128xf32, #tpu.memory_space<vmem>>, vector<16x128xf32>,
    %c1_i32 = arith.constant 1 : i32
    %13 = arith.index_cast %c1_i32 : i32 to index
    %c0_5 = arith.constant 0 : index
    %c0_6 = arith.constant 0 : index
    %14 = vector.load %arg2[%13, %c0_5, %c0_6] : memref<8x128x128xbf16, #tpu.memory_space<vmem>>, vector<1x128x128xbf16>
    %15 = vector.shape_cast %14 : vector<1x128x128xbf16> to vector<128x128xbf16>
    %cst_7 = arith.constant dense<0.000000e+00> : vector<16x128xf32>
    %16 = tpu.matmul %0, %15, %cst_7 {dimension_numbers = #tpu.dot_dimension_numbers<[1], [0], [0], [1], [0, 0, 1, 1], [], []>} : vector<16x128xbf16>, vector<128x128xbf16>, vector<16x128xf32> -> vector<16x128xf32>
    %17 = arith.index_cast %c1_i32 : i32 to index
    %c0_8 = arith.constant 0 : index
    %18 = vector.load %arg3[%17, %c0_8] : memref<8x128xf32, #tpu.memory_space<vmem>>, vector<1x128xf32>
    %19 = vector.broadcast %18 : vector<1x128xf32> to vector<16x128xf32>
    %20 = arith.addf %16, %19 : vector<16x128xf32>
    %c16_i32_9 = arith.constant 16 : i32
    %21 = arith.muli %c1_i32, %c16_i32_9 : i32
    %22 = tpu.assume_multiple %21, 16 : i32
    %23 = arith.index_cast %22 : i32 to index
    %c0_10 = arith.constant 0 : index
    %24 = vector.load %arg4[%23, %c0_10] : memref<128x128xf32, #tpu.memory_space<vmem>>, vector<16x128xf32>
    tpu.vector_store %arg4[%23, %c0_10], %20 {strides = array<i32>} : memref<128x128xf32, #tpu.memory_space<vmem>>, vector<16x128xf32>,
    %c2_i32 = arith.constant 2 : i32
    %25 = arith.index_cast %c2_i32 : i32 to index
    %c0_11 = arith.constant 0 : index
    %c0_12 = arith.constant 0 : index
    %26 = vector.load %arg2[%25, %c0_11, %c0_12] : memref<8x128x128xbf16, #tpu.memory_space<vmem>>, vector<1x128x128xbf16>
    %27 = vector.shape_cast %26 : vector<1x128x128xbf16> to vector<128x128xbf16>
    %cst_13 = arith.constant dense<0.000000e+00> : vector<16x128xf32>
    %28 = tpu.matmul %0, %27, %cst_13 {dimension_numbers = #tpu.dot_dimension_numbers<[1], [0], [0], [1], [0, 0, 1, 1], [], []>} : vector<16x128xbf16>, vector<128x128xbf16>, vector<16x128xf32> -> vector<16x128xf32>
    %29 = arith.index_cast %c2_i32 : i32 to index
    %c0_14 = arith.constant 0 : index
    %30 = vector.load %arg3[%29, %c0_14] : memref<8x128xf32, #tpu.memory_space<vmem>>, vector<1x128xf32>
    %31 = vector.broadcast %30 : vector<1x128xf32> to vector<16x128xf32>
    %32 = arith.addf %28, %31 : vector<16x128xf32>
    %c16_i32_15 = arith.constant 16 : i32
    %33 = arith.muli %c2_i32, %c16_i32_15 : i32
    %34 = tpu.assume_multiple %33, 16 : i32
    %35 = arith.index_cast %34 : i32 to index
    %c0_16 = arith.constant 0 : index
    %36 = vector.load %arg4[%35, %c0_16] : memref<128x128xf32, #tpu.memory_space<vmem>>, vector<16x128xf32>
    tpu.vector_store %arg4[%35, %c0_16], %32 {strides = array<i32>} : memref<128x128xf32, #tpu.memory_space<vmem>>, vector<16x128xf32>,
    %c3_i32 = arith.constant 3 : i32
    %37 = arith.index_cast %c3_i32 : i32 to index
    %c0_17 = arith.constant 0 : index
    %c0_18 = arith.constant 0 : index
    %38 = vector.load %arg2[%37, %c0_17, %c0_18] : memref<8x128x128xbf16, #tpu.memory_space<vmem>>, vector<1x128x128xbf16>
    %39 = vector.shape_cast %38 : vector<1x128x128xbf16> to vector<128x128xbf16>
    %cst_19 = arith.constant dense<0.000000e+00> : vector<16x128xf32>
    %40 = tpu.matmul %0, %39, %cst_19 {dimension_numbers = #tpu.dot_dimension_numbers<[1], [0], [0], [1], [0, 0, 1, 1], [], []>} : vector<16x128xbf16>, vector<128x128xbf16>, vector<16x128xf32> -> vector<16x128xf32>
    %41 = arith.index_cast %c3_i32 : i32 to index
    %c0_20 = arith.constant 0 : index
    %42 = vector.load %arg3[%41, %c0_20] : memref<8x128xf32, #tpu.memory_space<vmem>>, vector<1x128xf32>
    %43 = vector.broadcast %42 : vector<1x128xf32> to vector<16x128xf32>
    %44 = arith.addf %40, %43 : vector<16x128xf32>
    %c16_i32_21 = arith.constant 16 : i32
    %45 = arith.muli %c3_i32, %c16_i32_21 : i32
    %46 = tpu.assume_multiple %45, 16 : i32
    %47 = arith.index_cast %46 : i32 to index
    %c0_22 = arith.constant 0 : index
    %48 = vector.load %arg4[%47, %c0_22] : memref<128x128xf32, #tpu.memory_space<vmem>>, vector<16x128xf32>
    tpu.vector_store %arg4[%47, %c0_22], %44 {strides = array<i32>} : memref<128x128xf32, #tpu.memory_space<vmem>>, vector<16x128xf32>,
    %c4_i32 = arith.constant 4 : i32
    %49 = arith.index_cast %c4_i32 : i32 to index
    %c0_23 = arith.constant 0 : index
    %c0_24 = arith.constant 0 : index
    %50 = vector.load %arg2[%49, %c0_23, %c0_24] : memref<8x128x128xbf16, #tpu.memory_space<vmem>>, vector<1x128x128xbf16>
    %51 = vector.shape_cast %50 : vector<1x128x128xbf16> to vector<128x128xbf16>
    %cst_25 = arith.constant dense<0.000000e+00> : vector<16x128xf32>
    %52 = tpu.matmul %0, %51, %cst_25 {dimension_numbers = #tpu.dot_dimension_numbers<[1], [0], [0], [1], [0, 0, 1, 1], [], []>} : vector<16x128xbf16>, vector<128x128xbf16>, vector<16x128xf32> -> vector<16x128xf32>
    %53 = arith.index_cast %c4_i32 : i32 to index
    %c0_26 = arith.constant 0 : index
    %54 = vector.load %arg3[%53, %c0_26] : memref<8x128xf32, #tpu.memory_space<vmem>>, vector<1x128xf32>
    %55 = vector.broadcast %54 : vector<1x128xf32> to vector<16x128xf32>
    %56 = arith.addf %52, %55 : vector<16x128xf32>
    %c16_i32_27 = arith.constant 16 : i32
    %57 = arith.muli %c4_i32, %c16_i32_27 : i32
    %58 = tpu.assume_multiple %57, 16 : i32
    %59 = arith.index_cast %58 : i32 to index
    %c0_28 = arith.constant 0 : index
    %60 = vector.load %arg4[%59, %c0_28] : memref<128x128xf32, #tpu.memory_space<vmem>>, vector<16x128xf32>
    tpu.vector_store %arg4[%59, %c0_28], %56 {strides = array<i32>} : memref<128x128xf32, #tpu.memory_space<vmem>>, vector<16x128xf32>,
    %c5_i32 = arith.constant 5 : i32
    %61 = arith.index_cast %c5_i32 : i32 to index
    %c0_29 = arith.constant 0 : index
    %c0_30 = arith.constant 0 : index
    %62 = vector.load %arg2[%61, %c0_29, %c0_30] : memref<8x128x128xbf16, #tpu.memory_space<vmem>>, vector<1x128x128xbf16>
    %63 = vector.shape_cast %62 : vector<1x128x128xbf16> to vector<128x128xbf16>
    %cst_31 = arith.constant dense<0.000000e+00> : vector<16x128xf32>
    %64 = tpu.matmul %0, %63, %cst_31 {dimension_numbers = #tpu.dot_dimension_numbers<[1], [0], [0], [1], [0, 0, 1, 1], [], []>} : vector<16x128xbf16>, vector<128x128xbf16>, vector<16x128xf32> -> vector<16x128xf32>
    %65 = arith.index_cast %c5_i32 : i32 to index
    %c0_32 = arith.constant 0 : index
    %66 = vector.load %arg3[%65, %c0_32] : memref<8x128xf32, #tpu.memory_space<vmem>>, vector<1x128xf32>
    %67 = vector.broadcast %66 : vector<1x128xf32> to vector<16x128xf32>
    %68 = arith.addf %64, %67 : vector<16x128xf32>
    %c16_i32_33 = arith.constant 16 : i32
    %69 = arith.muli %c5_i32, %c16_i32_33 : i32
    %70 = tpu.assume_multiple %69, 16 : i32
    %71 = arith.index_cast %70 : i32 to index
    %c0_34 = arith.constant 0 : index
    %72 = vector.load %arg4[%71, %c0_34] : memref<128x128xf32, #tpu.memory_space<vmem>>, vector<16x128xf32>
    tpu.vector_store %arg4[%71, %c0_34], %68 {strides = array<i32>} : memref<128x128xf32, #tpu.memory_space<vmem>>, vector<16x128xf32>,
    %c6_i32 = arith.constant 6 : i32
    %73 = arith.index_cast %c6_i32 : i32 to index
    %c0_35 = arith.constant 0 : index
    %c0_36 = arith.constant 0 : index
    %74 = vector.load %arg2[%73, %c0_35, %c0_36] : memref<8x128x128xbf16, #tpu.memory_space<vmem>>, vector<1x128x128xbf16>
    %75 = vector.shape_cast %74 : vector<1x128x128xbf16> to vector<128x128xbf16>
    %cst_37 = arith.constant dense<0.000000e+00> : vector<16x128xf32>
    %76 = tpu.matmul %0, %75, %cst_37 {dimension_numbers = #tpu.dot_dimension_numbers<[1], [0], [0], [1], [0, 0, 1, 1], [], []>} : vector<16x128xbf16>, vector<128x128xbf16>, vector<16x128xf32> -> vector<16x128xf32>
    %77 = arith.index_cast %c6_i32 : i32 to index
    %c0_38 = arith.constant 0 : index
    %78 = vector.load %arg3[%77, %c0_38] : memref<8x128xf32, #tpu.memory_space<vmem>>, vector<1x128xf32>
    %79 = vector.broadcast %78 : vector<1x128xf32> to vector<16x128xf32>
    %80 = arith.addf %76, %79 : vector<16x128xf32>
    %c16_i32_39 = arith.constant 16 : i32
    %81 = arith.muli %c6_i32, %c16_i32_39 : i32
    %82 = tpu.assume_multiple %81, 16 : i32
    %83 = arith.index_cast %82 : i32 to index
    %c0_40 = arith.constant 0 : index
    %84 = vector.load %arg4[%83, %c0_40] : memref<128x128xf32, #tpu.memory_space<vmem>>, vector<16x128xf32>
    tpu.vector_store %arg4[%83, %c0_40], %80 {strides = array<i32>} : memref<128x128xf32, #tpu.memory_space<vmem>>, vector<16x128xf32>,
    %c7_i32 = arith.constant 7 : i32
    %85 = arith.index_cast %c7_i32 : i32 to index
    %c0_41 = arith.constant 0 : index
    %c0_42 = arith.constant 0 : index
    %86 = vector.load %arg2[%85, %c0_41, %c0_42] : memref<8x128x128xbf16, #tpu.memory_space<vmem>>, vector<1x128x128xbf16>
    %87 = vector.shape_cast %86 : vector<1x128x128xbf16> to vector<128x128xbf16>
    %cst_43 = arith.constant dense<0.000000e+00> : vector<16x128xf32>
    %88 = tpu.matmul %0, %87, %cst_43 {dimension_numbers = #tpu.dot_dimension_numbers<[1], [0], [0], [1], [0, 0, 1, 1], [], []>} : vector<16x128xbf16>, vector<128x128xbf16>, vector<16x128xf32> -> vector<16x128xf32>
    %89 = arith.index_cast %c7_i32 : i32 to index
    %c0_44 = arith.constant 0 : index
    %90 = vector.load %arg3[%89, %c0_44] : memref<8x128xf32, #tpu.memory_space<vmem>>, vector<1x128xf32>
    %91 = vector.broadcast %90 : vector<1x128xf32> to vector<16x128xf32>
    %92 = arith.addf %88, %91 : vector<16x128xf32>
    %c16_i32_45 = arith.constant 16 : i32
    %93 = arith.muli %c7_i32, %c16_i32_45 : i32
    %94 = tpu.assume_multiple %93, 16 : i32
    %95 = arith.index_cast %94 : i32 to index
    %c0_46 = arith.constant 0 : index
    %96 = vector.load %arg4[%95, %c0_46] : memref<128x128xf32, #tpu.memory_space<vmem>>, vector<16x128xf32>
    tpu.vector_store %arg4[%95, %c0_46], %92 {strides = array<i32>} : memref<128x128xf32, #tpu.memory_space<vmem>>, vector<16x128xf32>,
    %c8_i32 = arith.constant 8 : i32
    return
  }
  func.func @transform_0(%arg0: i32) -> (i32, i32) {
    %c0_i32 = arith.constant 0 : i32
    %c0_i32_0 = arith.constant 0 : i32
    %c0_i32_1 = arith.constant 0 : i32
    return %c0_i32, %c0_i32_0 : i32, i32
  }
  func.func @transform_1(%arg0: i32) -> (i32, i32, i32) {
    %c0_i32 = arith.constant 0 : i32
    %c0_i32_0 = arith.constant 0 : i32
    %c0_i32_1 = arith.constant 0 : i32
    return %arg0, %c0_i32, %c0_i32_0 : i32, i32, i32
  }
  func.func @transform_2(%arg0: i32) -> (i32, i32) {
    %c0_i32 = arith.constant 0 : i32
    %c0_i32_0 = arith.constant 0 : i32
    return %arg0, %c0_i32 : i32, i32
  }
  func.func @transform_3(%arg0: i32) -> (i32, i32) {
    %c0_i32 = arith.constant 0 : i32
    %c0_i32_0 = arith.constant 0 : i32
    return %arg0, %c0_i32 : i32, i32
  }
}

</mosaic_0001>

<bundles_post_ra>
// kernel: tpu_custom_call.1
= control target key start
LH: loop header
LB: loop body
LE: loop exit
PB: predicated region body
PF: predicated region fallthrough
CT: control target
= control target key end

     0   :  { %s2061_s0 = inlined_call_operand.hbm [shape: bf16[16,128], index: 0, kind: input, shape index: {}]   ;;  %s2062_s1 = inlined_call_operand.hbm [shape: bf16[64,128,128], index: 1, kind: input, shape index: {}]   ;;  %s2063_s2 = inlined_call_operand.hbm [shape: f32[64,128], index: 2, kind: input, shape index: {}]   ;;  %s2064_s3 = inlined_call_operand.hbm [shape: f32[1024,128], index: 3, kind: output, shape index: {}]  }
   0x1   :  { %2065 = sst [smem:[#allocation12_spill]] %s2061_s0 }
   0x2   :  { %8 = vsyncpa [#allocation3], 0 }
   0x3   :  { %9 = vsyncpa [#allocation6], 0 }
   0x4   :  { %11 = vsyncpa [#allocation6 + $0x1], 0 }
   0x5   :  { %12 = vsyncpa [#allocation4], 0 }
   0x6   :  { %14 = vsyncpa [#allocation4 + $0x1], 0  ;;  %s1781_s12 = smov 0   ;;  %s1783_s13 = smov 0  }
   0x7   :  { %s1785_s14 = smov 0   ;;  %s1787_s15 = smov 0  }
   0x8 LB: > { %s1802_s16 = sadd.s32 1, %s1754_s15   ;;  %s48_s17 = sadd.s32 1, %s1750_s14  ;;  %s1754_s15 = sphi %s1787_s15, %s2075_s15   ;;  %s1750_s14 = sphi %s1785_s14, %s2074_s14   ;;  %s1746_s13 = sphi %s1783_s13, %s2073_s13   ;;  %s1742_s12 = sphi %s1781_s12, %s2072_s12  }
   0x9   : > { %s45_s18 = ssub.s32 %s1754_s15, %s1802_s16  ;;  %p55_p0 = scmp.ne.s32.totalorder %s1750_s14, %s1746_s13 }
   0xa   : > { %p46_p1 = scmp.eq.s32.totalorder %s45_s18, 0  ;;  %p56_p2 = scmp.eq.s32.totalorder %s1754_s15, 0 }
   0xb   : > { %p1546_p4 = scmp.lt.s32.totalorder %s1754_s15, 8  ;;  %s151_s20 = sand.u32 1, %s1754_s15  }
   0xc   : > { %s1811_s19 = scalar_select %p46_p1, %s1750_s14, %s48_s17  }
   0xd   : > { %p57_p3 = por %p56_p2, %p55_p0  ;;  %s153_s21 = sand.u32 1, %s1750_s14  }
   0xe   : > { %s1050_s22 = sshll.u32 %s153_s21, 9  ;;  %s1453_s23 = sshll.u32 %s1754_s15, 9 }
   0xf   : > { %s161_s26 = scalar_lea.hbm %s2062_s1, %s1453_s23  ;;  %s155_s28 = scalar_lea.vmem [#allocation5], %s1050_s22 }
  0x10   : > { %s162_s27 = sshll.u32 %s161_s26, 4  ;;  %s164_s29 = sshll.u32 %s155_s28, 4  ;;  %s163_s27 = int_to_ptr.hbm [resolvable:$true] %s162_s27  ;;  %s165_s29 = int_to_ptr.vmem [resolvable:$true] %s164_s29 }
  0x11   : > { %p1825_p5 = pnand %p1546_p4, %p57_p3  ;;  %s1830_s4 = sadd.s32 4294967295, %s1754_s15  }
  0x12   : > { %s1046_s5 = sadd.s32 4294967294, %s1754_s15   ;;  %s1833_s6 = scalar_lea.sflag [#allocation6], %s151_s20 }
  0x13   : > { %s1594_s7 = sshra.s32 %s163_s27, 4  ;;  %p1598_p7 = pneg %p1825_p5  ;;  %s1595_s7 = int_to_ptr.hbm [resolvable:$true] %s1594_s7 }
  0x14   : > { %s1596_s8 = scalar_lea.hbm %s1595_s7, 512  ;;  %s1601_s11 = scalar_lea.hbm %s2062_s1, 4096 }
  0x15   : > { %p1597_p6 = scmp.ne.s32.totalorder %s1595_s7, %s1596_s8  ;;  %p1602_p10 = scmp.lt.s32.totalorder %s1595_s7, %s2062_s1 }
  0x16   : > { %p1603_p11 = scmp.lt.s32.totalorder %s1601_s11, %s1596_s8 }
  0x17   : > { %p1599_p8 = pnand %p1598_p7, %p1597_p6 }
  0x18   : > { %p1604_p12 = por %p1603_p11, %p1602_p10 }
  0x19   : > { %p1600_p9 = pneg %p1599_p8 }
  0x1b   : > { %p1605_p13 = pnand %p1604_p12, %p1600_p9 }
  0x1d   : > { %1608 = shalt.err (!%p1605_p13)
}
  0x1e   : > { %s1756_s20 = smov 64   ;;  %s1757_s22 = smov 4  }
  0x1f   : > { %1537 = dma.hbm_to_vmem [thread:$0]  (!%p1825_p5), %s163_s27, 8192, %s165_s29, %s1833_s6, %s1756_s20, %s1756_s20, %s1757_s22  }
  0x20   : > { %p61_p1 = scmp.ne.s32.totalorder %s1746_s13, %s1742_s12  ;;  %p62_p2 = scmp.eq.s32.totalorder %s1830_s4, 0 }
  0x21   : > { %p111_p3 = scmp.eq.s32.totalorder %s1830_s4, 7  ;;  %p117_p4 = scmp.eq.s32.totalorder %s1046_s5, 7 }
  0x22   : > { %p1858_p6 = por %p62_p2, %p61_p1  ;;  %p1047_p8 = scmp.ge.s32.totalorder %s1754_s15, 1 }
  0x23   : > { %p1866_p9 = por %p111_p3, %p55_p0  ;;  %p1870_p10 = por %p117_p4, %p61_p1 }
  0x24   : > { %p124_p11 = scmp.lt.s32.totalorder %s1754_s15, 9  ;;  %s2070_s0 = sld [smem:[#allocation12_spill]] }
  0x25   : > { %s1758_s5 = smov [#allocation2]   ;;  %s1054_s8 = sshll.u32 %s153_s21, 3 }
  0x26   : > { %p1878_p12 = pnand %p1047_p8, %p124_p11  ;;  %s137_s7 = sshll.u32 %s1758_s5, 4  ;;  %s138_s7 = int_to_ptr.vmem [resolvable:$true] %s137_s7 }
  0x27   : > { %s1055_s9 = sshll.u32 %s1754_s15, 3  ;;  %s178_s26 = scalar_lea.vmem [#allocation7], %s1054_s8 }
  0x28   : > { %p1530_p0 = pneg %p1878_p12  ;;  %s182_s17 = scalar_lea.hbm %s2063_s2, %s1055_s9 }
  0x29   : > { %s184_s18 = sshll.u32 %s182_s17, 4  ;;  %s186_s27 = sshll.u32 %s178_s26, 4  ;;  %s185_s18 = int_to_ptr.hbm [resolvable:$true] %s184_s18  ;;  %s187_s27 = int_to_ptr.vmem [resolvable:$true] %s186_s27 }
  0x2a   : > { %s135_s28 = sshll.u32 %s2070_s0, 4  ;;  %p1531_p13 = pnand %p1530_p0, %p62_p2  ;;  %s136_s28 = int_to_ptr.hbm [resolvable:$true] %s135_s28 }
  0x2b   : > { %s1654_s21 = sshra.s32 %s185_s18, 4  ;;  %s1661_s9 = scalar_lea.hbm %s2063_s2, 64  ;;  %s1655_s21 = int_to_ptr.hbm [resolvable:$true] %s1654_s21 }
  0x2c   : > { %1533 = dma.hbm_to_vmem [thread:$0]  (!%p1531_p13), %s136_s28, 128, %s138_s7, [#allocation3], %s1756_s20, %s1756_s20, %s1757_s22  }
  0x2d   : > { %s1656_s5 = scalar_lea.hbm %s1655_s21, 8  ;;  %p1662_p8 = scmp.lt.s32.totalorder %s1655_s21, %s2063_s2 }
  0x2e   : > { %p1657_p1 = scmp.ne.s32.totalorder %s1655_s21, %s1656_s5  ;;  %p1663_p11 = scmp.lt.s32.totalorder %s1661_s9, %s1656_s5 }
  0x30   : > { %p1659_p3 = pnand %p1657_p1, %p1598_p7  ;;  %p1664_p0 = por %p1663_p11, %p1662_p8 }
  0x32   : > { %p1660_p4 = pneg %p1659_p3 }
  0x34   : > { %p1665_p13 = pnand %p1664_p0, %p1660_p4 }
  0x36   : > { %1668 = shalt.err (!%p1665_p13)
}
  0x37   : > { %1540 = dma.hbm_to_vmem [thread:$0]  (!%p1825_p5), %s185_s18, 128, %s187_s27, %s1833_s6  }
  0x38   : > { %195 = sbr.rel (%p1878_p12) target bundleno = 279 (0x117), region = 32 }
  0x3d   : > { %1729 = dma.done.wait (%p62_p2), [#allocation3], 128  }
  0x3e   : > { %1731 = vsyncadd (%p62_p2), [#allocation3], 4294967168  ;;  %s202_s0 = sand.u32 1, %s1830_s4   ;;  %s1915_s20 = sand.u32 1, %s1746_s13  }
  0x3f   : > { %s1058_s22 = sshll.u32 %s1915_s20, 9  ;;  %s203_s30 = scalar_lea.sflag [#allocation6], %s202_s0 }
  0x40   : > { %s1918_s28 = scalar_lea.vmem [#allocation5], %s1058_s22 }
  0x41   : > { %1733 = dma.done.wait (%p1858_p6), %s203_s30, 8320  }
  0x42   : > { %1735 = vsyncadd (%p1858_p6), %s203_s30, 4294958976  ;;  %v1462_v0 = vld [vmem:[%s1918_s28 + $0x38] sm:$0xff]  ;;  %v1461_v4 = vld [vmem:[%s1918_s28 + $0x30] sm:$0xff]  ;;  %s1059_s6 = sshll.u32 %s1915_s20, 3  ;;  %s1060_s29 = sshll.u32 %s1915_s20, 7 }
  0x43   : > { %v1470_v1 = vld [vmem:[%s1918_s28 + $0x78] sm:$0xff]  ;;  %321 = vmatpush.bf16.msra.mxu0 %v1462_v0  ;;  %v1469_v5 = vld [vmem:[%s1918_s28 + $0x70] sm:$0xff]  ;;  %v1460_v8 = vld [vmem:[%s1918_s28 + $0x28] sm:$0xff]  ;;  %s1947_s23 = scalar_lea.vmem [#allocation7], %s1059_s6  ;;  %s2006_s7 = scalar_lea.vmem [#allocation8], %s1060_s29 }
  0x44   : > { %v1478_v2 = vld [vmem:[%s1918_s28 + $0xb8] sm:$0xff]  ;;  %404 = vmatpush.bf16.msra.mxu1 %v1470_v1  ;;  %v1477_v6 = vld [vmem:[%s1918_s28 + $0xb0] sm:$0xff]  ;;  %v1468_v9 = vld [vmem:[%s1918_s28 + $0x68] sm:$0xff]  ;;  %s1519_s17 = sshll.u32 %s1830_s4, 7  ;;  %s938_s21 = sshll.u32 %s2006_s7, 4  ;;  %s939_s21 = int_to_ptr.vmem [resolvable:$true] %s938_s21 }
  0x45   : > { %v1486_v3 = vld [vmem:[%s1918_s28 + $0xf8] sm:$0xff]  ;;  %488 = vmatpush.bf16.msra.mxu2 %v1478_v2  ;;  %v1485_v7 = vld [vmem:[%s1918_s28 + $0xf0] sm:$0xff]  ;;  %v1476_v10 = vld [vmem:[%s1918_s28 + $0xa8] sm:$0xff]  ;;  %s937_s27 = scalar_lea.hbm %s2064_s3, %s1519_s17  ;;  %s926_s5 = scalar_lea.sflag [#allocation4], %s1915_s20 }
  0x46   : > { %572 = vmatpush.bf16.msra.mxu3 %v1486_v3  ;;  %v1484_v11 = vld [vmem:[%s1918_s28 + $0xe8] sm:$0xff]  ;;  %v1459_v12 = vld [vmem:[%s1918_s28 + $0x20] sm:$0xff]  ;;  %v1458_v16 = vld [vmem:[%s1918_s28 + $0x18] sm:$0xff]  ;;  %s940_s4 = sshll.u32 %s937_s27, 4  ;;  %s1704_s0 = scalar_lea.hbm %s2064_s3, 1024  ;;  %s941_s4 = int_to_ptr.hbm [resolvable:$true] %s940_s4 }
  0x47   : > { %322 = vmatpush.bf16.msra.mxu0 %v1461_v4  ;;  %v1467_v13 = vld [vmem:[%s1918_s28 + $0x60] sm:$0xff]  ;;  %v1466_v17 = vld [vmem:[%s1918_s28 + $0x58] sm:$0xff]  ;;  %v1457_v20 = vld [vmem:[%s1918_s28 + $0x10] sm:$0xff]  ;;  %s1698_s10 = sshra.s32 %s941_s4, 4  ;;  %s1699_s10 = int_to_ptr.hbm [resolvable:$true] %s1698_s10 }
  0x48   : > { %405 = vmatpush.bf16.msra.mxu1 %v1469_v5  ;;  %v1475_v14 = vld [vmem:[%s1918_s28 + $0xa0] sm:$0xff]  ;;  %v1474_v18 = vld [vmem:[%s1918_s28 + $0x98] sm:$0xff]  ;;  %v1465_v21 = vld [vmem:[%s1918_s28 + $0x50] sm:$0xff]  ;;  %s1700_s9 = scalar_lea.hbm %s1699_s10, 128  ;;  %p1705_p6 = scmp.lt.s32.totalorder %s1699_s10, %s2064_s3 }
  0x49   : > { %489 = vmatpush.bf16.msra.mxu2 %v1477_v6  ;;  %v1483_v15 = vld [vmem:[%s1918_s28 + $0xe0] sm:$0xff]  ;;  %v1482_v19 = vld [vmem:[%s1918_s28 + $0xd8] sm:$0xff]  ;;  %v1473_v22 = vld [vmem:[%s1918_s28 + $0x90] sm:$0xff]  ;;  %p1701_p5 = scmp.ne.s32.totalorder %s1699_s10, %s1700_s9  ;;  %p1706_p12 = scmp.lt.s32.totalorder %s1704_s0, %s1700_s9 }
  0x4a   : > { %573 = vmatpush.bf16.msra.mxu3 %v1485_v7  ;;  %v1481_v23 = vld [vmem:[%s1918_s28 + $0xd0] sm:$0xff]  ;;  %v1456_v24 = vld [vmem:[%s1918_s28 + $0x8] sm:$0xff]  ;;  %v1455_v28 = vld [vmem:[%s1918_s28] sm:$0xff] }
  0x4b   : > { %323 = vmatpush.bf16.msra.mxu0 %v1460_v8  ;;  %v1464_v25 = vld [vmem:[%s1918_s28 + $0x48] sm:$0xff]  ;;  %v1463_v29 = vld [vmem:[%s1918_s28 + $0x40] sm:$0xff]  ;;  %v1494_v32 = vld [vmem:[%s1918_s28 + $0x138] sm:$0xff]  ;;  %p1702_p7 = pnand %p1701_p5, %p1866_p9  ;;  %p1707_p1 = por %p1706_p12, %p1705_p6 }
  0x4c   : > { %406 = vmatpush.bf16.msra.mxu1 %v1468_v9  ;;  %v1472_v26 = vld [vmem:[%s1918_s28 + $0x88] sm:$0xff]  ;;  %v1471_v30 = vld [vmem:[%s1918_s28 + $0x80] sm:$0xff]  ;;  %v1502_v33 = vld [vmem:[%s1918_s28 + $0x178] sm:$0xff] }
  0x4d   : > { %490 = vmatpush.bf16.msra.mxu2 %v1476_v10  ;;  %v1480_v27 = vld [vmem:[%s1918_s28 + $0xc8] sm:$0xff]  ;;  %v1479_v31 = vld [vmem:[%s1918_s28 + $0xc0] sm:$0xff]  ;;  %v1510_v34 = vld [vmem:[%s1918_s28 + $0x1b8] sm:$0xff]  ;;  %p1703_p2 = pneg %p1702_p7 }
  0x4e   : > { %574 = vmatpush.bf16.msra.mxu3 %v1484_v11  ;;  %v1518_v35 = vld [vmem:[%s1918_s28 + $0x1f8] sm:$0xff]  ;;  %v1493_v37 = vld [vmem:[%s1918_s28 + $0x130] sm:$0xff]  ;;  %v1492_v41 = vld [vmem:[%s1918_s28 + $0x128] sm:$0xff] }
  0x4f   : > { %324 = vmatpush.bf16.msra.mxu0 %v1459_v12  ;;  %v1963_v36 = vld [vmem:[#allocation2] sm:$0xff]  ;;  %v1501_v38 = vld [vmem:[%s1918_s28 + $0x170] sm:$0xff]  ;;  %v1500_v42 = vld [vmem:[%s1918_s28 + $0x168] sm:$0xff]  ;;  %p1708_p3 = pnand %p1707_p1, %p1703_p2 }
  0x50   : > { %407 = vmatpush.bf16.msra.mxu1 %v1467_v13  ;;  %v1509_v39 = vld [vmem:[%s1918_s28 + $0x1b0] sm:$0xff]  ;;  %v1508_v43 = vld [vmem:[%s1918_s28 + $0x1a8] sm:$0xff]  ;;  %v1491_v45 = vld [vmem:[%s1918_s28 + $0x120] sm:$0xff] }
  0x51   : > { %491 = vmatpush.bf16.msra.mxu2 %v1475_v14  ;;  %v1517_v40 = vld [vmem:[%s1918_s28 + $0x1f0] sm:$0xff]  ;;  %v1516_v44 = vld [vmem:[%s1918_s28 + $0x1e8] sm:$0xff]  ;;  %v1499_v46 = vld [vmem:[%s1918_s28 + $0x160] sm:$0xff] }
  0x52   : > { %575 = vmatpush.bf16.msra.mxu3 %v1483_v15  ;;  %v1507_v47 = vld [vmem:[%s1918_s28 + $0x1a0] sm:$0xff]  ;;  %v1490_v49 = vld [vmem:[%s1918_s28 + $0x118] sm:$0xff]  ;;  %v1489_v53 = vld [vmem:[%s1918_s28 + $0x110] sm:$0xff] }
  0x53   : > { %325 = vmatpush.bf16.msra.mxu0 %v1458_v16  ;;  %v1515_v48 = vld [vmem:[%s1918_s28 + $0x1e0] sm:$0xff]  ;;  %v1498_v50 = vld [vmem:[%s1918_s28 + $0x158] sm:$0xff]  ;;  %v1497_v54 = vld [vmem:[%s1918_s28 + $0x150] sm:$0xff] }
  0x54   : > { %408 = vmatpush.bf16.msra.mxu1 %v1466_v17  ;;  %v1506_v51 = vld [vmem:[%s1918_s28 + $0x198] sm:$0xff]  ;;  %v1505_v55 = vld [vmem:[%s1918_s28 + $0x190] sm:$0xff]  ;;  %v1488_v57 = vld [vmem:[%s1918_s28 + $0x108] sm:$0xff] }
  0x55   : > { %492 = vmatpush.bf16.msra.mxu2 %v1474_v18  ;;  %v1514_v52 = vld [vmem:[%s1918_s28 + $0x1d8] sm:$0xff]  ;;  %v1513_v56 = vld [vmem:[%s1918_s28 + $0x1d0] sm:$0xff]  ;;  %v1496_v58 = vld [vmem:[%s1918_s28 + $0x148] sm:$0xff] }
  0x56   : > { %576 = vmatpush.bf16.msra.mxu3 %v1482_v19  ;;  %v1504_v59 = vld [vmem:[%s1918_s28 + $0x188] sm:$0xff]  ;;  %v1487_v61 = vld [vmem:[%s1918_s28 + $0x100] sm:$0xff] }
  0x57   : > { %326 = vmatpush.bf16.msra.mxu0 %v1457_v20  ;;  %v1512_v60 = vld [vmem:[%s1918_s28 + $0x1c8] sm:$0xff]  ;;  %v1495_v62 = vld [vmem:[%s1918_s28 + $0x140] sm:$0xff] }
  0x58   : > { %409 = vmatpush.bf16.msra.mxu1 %v1465_v21  ;;  %v1503_v63 = vld [vmem:[%s1918_s28 + $0x180] sm:$0xff] }
  0x59   : > { %493 = vmatpush.bf16.msra.mxu2 %v1473_v22  ;;  %v1511_v0 = vld [vmem:[%s1918_s28 + $0x1c0] sm:$0xff] }
  0x5a   : > { %577 = vmatpush.bf16.msra.mxu3 %v1481_v23  ;;  %v1586_v1 = vld [vmem:[%s1947_s23] ss:$0 sm:$0xff]  ;;  %v1587_v2 = vld [vmem:[%s1947_s23 + $0x1] ss:$0 sm:$0xff]  ;;  %v1588_v7 = vld [vmem:[%s1947_s23 + $0x2] ss:$0 sm:$0xff] }
  0x5b   : > { %327 = vmatpush.bf16.msra.mxu0 %v1456_v24  ;;  %v1589_v8 = vld [vmem:[%s1947_s23 + $0x3] ss:$0 sm:$0xff]  ;;  %v1590_v21 = vld [vmem:[%s1947_s23 + $0x4] ss:$0 sm:$0xff]  ;;  %v1591_v22 = vld [vmem:[%s1947_s23 + $0x5] ss:$0 sm:$0xff] }
  0x5c   : > { %410 = vmatpush.bf16.msra.mxu1 %v1464_v25 }
  0x5d   : > { %494 = vmatpush.bf16.msra.mxu2 %v1472_v26 }
  0x5e   : > { %578 = vmatpush.bf16.msra.mxu3 %v1480_v27  ;;  %v1592_v27 = vld [vmem:[%s1947_s23 + $0x6] ss:$0 sm:$0xff] }
  0x5f   : > { %328 = vmatpush.bf16.msra.mxu0 %v1455_v28  ;;  %v1593_v28 = vld [vmem:[%s1947_s23 + $0x7] ss:$0 sm:$0xff] }
  0x60   : > { %411 = vmatpush.bf16.msra.mxu1 %v1463_v29 }
  0x61   : > { %495 = vmatpush.bf16.msra.mxu2 %v1471_v30 }
  0x62   : > { %579 = vmatpush.bf16.msra.mxu3 %v1479_v31  ;;  %329 = vmatmul.bf16.vlgmr.msra.gmra.mxu0 %v1963_v36 }
  0x63   : > { %656 = vmatpush.bf16.msrb.mxu0 %v1494_v32  ;;  %412 = vmatmul.bf16.vlgmr.msra.gmra.mxu1 %v1963_v36 }
  0x64   : > { %740 = vmatpush.bf16.msrb.mxu1 %v1502_v33  ;;  %496 = vmatmul.bf16.vlgmr.msra.gmra.mxu2 %v1963_v36 }
  0x65   : > { %824 = vmatpush.bf16.msrb.mxu2 %v1510_v34  ;;  %580 = vmatmul.bf16.vlgmr.msra.gmra.mxu3 %v1963_v36 }
  0x66   : > { %908 = vmatpush.bf16.msrb.mxu3 %v1518_v35 }
  0x67   : > { %657 = vmatpush.bf16.msrb.mxu0 %v1493_v37 }
  0x68   : > { %741 = vmatpush.bf16.msrb.mxu1 %v1501_v38 }
  0x69   : > { %825 = vmatpush.bf16.msrb.mxu2 %v1509_v39 }
  0x6a   : > { %909 = vmatpush.bf16.msrb.mxu3 %v1517_v40 }
  0x6b   : > { %658 = vmatpush.bf16.msrb.mxu0 %v1492_v41 }
  0x6c   : > { %742 = vmatpush.bf16.msrb.mxu1 %v1500_v42 }
  0x6d   : > { %826 = vmatpush.bf16.msrb.mxu2 %v1508_v43 }
  0x6e   : > { %910 = vmatpush.bf16.msrb.mxu3 %v1516_v44 }
  0x6f   : > { %659 = vmatpush.bf16.msrb.mxu0 %v1491_v45 }
  0x70   : > { %743 = vmatpush.bf16.msrb.mxu1 %v1499_v46 }
  0x71   : > { %827 = vmatpush.bf16.msrb.mxu2 %v1507_v47 }
  0x72   : > { %911 = vmatpush.bf16.msrb.mxu3 %v1515_v48 }
  0x73   : > { %660 = vmatpush.bf16.msrb.mxu0 %v1490_v49 }
  0x74   : > { %744 = vmatpush.bf16.msrb.mxu1 %v1498_v50 }
  0x75   : > { %828 = vmatpush.bf16.msrb.mxu2 %v1506_v51 }
  0x76   : > { %912 = vmatpush.bf16.msrb.mxu3 %v1514_v52 }
  0x77   : > { %661 = vmatpush.bf16.msrb.mxu0 %v1489_v53 }
  0x78   : > { %745 = vmatpush.bf16.msrb.mxu1 %v1497_v54 }
  0x79   : > { %829 = vmatpush.bf16.msrb.mxu2 %v1505_v55 }
  0x7a   : > { %913 = vmatpush.bf16.msrb.mxu3 %v1513_v56 }
  0x7b   : > { %662 = vmatpush.bf16.msrb.mxu0 %v1488_v57 }
  0x7c   : > { %746 = vmatpush.bf16.msrb.mxu1 %v1496_v58 }
  0x7d   : > { %830 = vmatpush.bf16.msrb.mxu2 %v1504_v59 }
  0x7e   : > { %914 = vmatpush.bf16.msrb.mxu3 %v1512_v60 }
  0x7f   : > { %663 = vmatpush.bf16.msrb.mxu0 %v1487_v61 }
  0x80   : > { %747 = vmatpush.bf16.msrb.mxu1 %v1495_v62 }
  0x81   : > { %831 = vmatpush.bf16.msrb.mxu2 %v1503_v63 }
  0x82   : > { %915 = vmatpush.bf16.msrb.mxu3 %v1511_v0  ;;  %664 = vmatmul.bf16.vlgmr.msrb.gmra.mxu0 %v1963_v36 }
  0x83   : > { %748 = vmatmul.bf16.vlgmr.msrb.gmra.mxu1 %v1963_v36 }
  0x84   : > { %832 = vmatmul.bf16.vlgmr.msrb.gmra.mxu2 %v1963_v36 }
  0x85   : > { %916 = vmatmul.bf16.vlgmr.msrb.gmra.mxu3 %v1963_v36 }
  0xdf   : > { %v330_v3 = vpop.f32.mrf.mxu0 }
  0xe0   : > { %v413_v4 = vpop.f32.mrf.mxu1  ;;  %v331_v5 = vadd.f32 %v1586_v1, %v330_v3 }
  0xe1   : > { %v414_v6 = vadd.f32 %v1587_v2, %v413_v4 }
  0xe2   : > { %335 = vst [vmem:[%s2006_s7] sm:$0xff] %v331_v5 }
  0xe3   : > { %1145 = vst [vmem:[%s2006_s7 + $0x10] sm:$0xff] %v414_v6 }
  0xe7   : > { %v497_v9 = vpop.f32.mrf.mxu2  ;;  %v332_v13 = vpop.f32.mrf.mxu0 }
  0xe8   : > { %v581_v10 = vpop.f32.mrf.mxu3  ;;  %v498_v11 = vadd.f32 %v1588_v7, %v497_v9  ;;  %v415_v14 = vpop.f32.mrf.mxu1  ;;  %v333_v15 = vadd.f32 %v1586_v1, %v332_v13 }
  0xe9   : > { %v582_v12 = vadd.f32 %v1589_v8, %v581_v10  ;;  %v416_v16 = vadd.f32 %v1587_v2, %v415_v14 }
  0xea   : > { %1195 = vst [vmem:[%s2006_s7 + $0x20] sm:$0xff] %v498_v11 }
  0xeb   : > { %1245 = vst [vmem:[%s2006_s7 + $0x30] sm:$0xff] %v582_v12 }
  0xec   : > { %336 = vst [vmem:[%s2006_s7 + $0x8] sm:$0xff] %v333_v15 }
  0xed   : > { %1146 = vst [vmem:[%s2006_s7 + $0x18] sm:$0xff] %v416_v16 }
  0xef   : > { %v499_v17 = vpop.f32.mrf.mxu2 }
  0xf0   : > { %v583_v18 = vpop.f32.mrf.mxu3  ;;  %v500_v19 = vadd.f32 %v1588_v7, %v499_v17 }
  0xf1   : > { %v584_v20 = vadd.f32 %v1589_v8, %v583_v18 }
  0xf2   : > { %1196 = vst [vmem:[%s2006_s7 + $0x28] sm:$0xff] %v500_v19 }
  0xf3   : > { %1246 = vst [vmem:[%s2006_s7 + $0x38] sm:$0xff] %v584_v20 }
  0xff   : > { %v665_v23 = vpop.f32.mrf.mxu0 }
 0x100   : > { %v749_v24 = vpop.f32.mrf.mxu1  ;;  %v666_v25 = vadd.f32 %v1590_v21, %v665_v23 }
 0x101   : > { %v750_v26 = vadd.f32 %v1591_v22, %v749_v24 }
 0x102   : > { %1295 = vst [vmem:[%s2006_s7 + $0x40] sm:$0xff] %v666_v25 }
 0x103   : > { %1345 = vst [vmem:[%s2006_s7 + $0x50] sm:$0xff] %v750_v26 }
 0x107   : > { %v833_v29 = vpop.f32.mrf.mxu2  ;;  %v667_v33 = vpop.f32.mrf.mxu0 }
 0x108   : > { %v917_v30 = vpop.f32.mrf.mxu3  ;;  %v834_v31 = vadd.f32 %v1592_v27, %v833_v29  ;;  %v751_v34 = vpop.f32.mrf.mxu1  ;;  %v668_v35 = vadd.f32 %v1590_v21, %v667_v33 }
 0x109   : > { %v918_v32 = vadd.f32 %v1593_v28, %v917_v30  ;;  %v752_v36 = vadd.f32 %v1591_v22, %v751_v34 }
 0x10a   : > { %1395 = vst [vmem:[%s2006_s7 + $0x60] sm:$0xff] %v834_v31 }
 0x10b   : > { %1445 = vst [vmem:[%s2006_s7 + $0x70] sm:$0xff] %v918_v32 }
 0x10c   : > { %1296 = vst [vmem:[%s2006_s7 + $0x48] sm:$0xff] %v668_v35 }
 0x10d   : > { %1346 = vst [vmem:[%s2006_s7 + $0x58] sm:$0xff] %v752_v36 }
 0x10f   : > { %v835_v37 = vpop.f32.mrf.mxu2 }
 0x110   : > { %v919_v38 = vpop.f32.mrf.mxu3  ;;  %v836_v39 = vadd.f32 %v1592_v27, %v835_v37 }
 0x111   : > { %v920_v40 = vadd.f32 %v1593_v28, %v919_v38 }
 0x112   : > { %1396 = vst [vmem:[%s2006_s7 + $0x68] sm:$0xff] %v836_v39 }
 0x113   : > { %1446 = vst [vmem:[%s2006_s7 + $0x78] sm:$0xff] %v920_v40 }
 0x114   : > { %1711 = shalt.err (!%p1708_p3)
}
 0x115   : > { %s1759_s20 = smov 128   ;;  %s1760_s28 = smov 8  }
 0x116   : > { %1528 = dma.vmem_to_hbm [thread:$0]  (%p1866_p9), %s939_s21, 2048, %s941_s4, %s926_s5, %s1759_s20, %s1759_s20, %s1760_s28  }
 0x117 PF: > { %p1548_p4 = scmp.ge.s32.totalorder %s1754_s15, 2  ;;  %s955_s6 = sand.u32 1, %s1742_s12  }
 0x118   : > { %s956_s23 = scalar_lea.sflag [#allocation4], %s955_s6 }
 0x119   : > { %p1542_p8 = pnand %p1548_p4, %p1870_p10 }
 0x11b   : > { %p1543_p11 = pneg %p1542_p8 }
 0x11d   : > { %1737 = dma.done.wait (%p1543_p11), %s956_s23, 2048  }
 0x11e   : > { %1739 = vsyncadd (%p1543_p11), %s956_s23, 4294965248  ;;  %p17_p0 = scmp.ge.s32.totalorder %s1802_s16, 10   ;;  %s2072_s12 = smov %s1746_s13 }
 0x11f   : > { %s2073_s13 = smov %s1750_s14  ;;  %s2074_s14 = smov %s1811_s19 }
 0x120   : > { %s2075_s15 = smov %s1802_s16  ;;  %19 = sbr.rel (!%p17_p0) target bundleno = 8 (0x8), region = 107 }
 0x125   :  { %962 = vsyncpa [#allocation3], 1 }
 0x126   :  { %964 = vsyncpa [#allocation3 + $0x1], 1 }
 0x127   :  { %965 = vsyncpa [#allocation6], 1 }
 0x128   :  { %967 = vsyncpa [#allocation6 + $0x1], 1 }
 0x129   :  { %968 = vsyncpa [#allocation4], 1 }
 0x12a   :  { %970 = vsyncpa [#allocation4 + $0x1], 1 }

</bundles_post_ra>
